<compile_context>
chip_gen: v7x
topology: tpu7x:2x2x1
jax: 0.10.0
libtpu: 0.0.40
codegen_flags: <defaults>
</compile_context>

<pallas_src>
import functools
import math

import jax
import jax.numpy as jnp
from jax import lax
from jax.experimental import pallas as pl
from jax.experimental.pallas import tpu as pltpu


# ----------------------------- Pallas kernel ------------------------------ #

def _layernorm(x, w, b, eps=1e-5):
    mu = jnp.mean(x, axis=-1, keepdims=True)
    xc = x - mu
    var = jnp.mean(xc * xc, axis=-1, keepdims=True)
    return xc * lax.rsqrt(var + eps) * w + b


def node_attention_kernel(num_heads, head_dim, n_nodes,
                          x_ref, vec_ref, wide_ref, mlpin_ref, w2_ref,
                          out_ref, h_ref):
    """One grid step == one AttentionBlock layer; activation carried in h_ref."""
    D = num_heads * head_dim
    N = n_nodes
    R = x_ref.shape[0]          # B * N rows
    B = R // N
    layer = pl.program_id(0)

    # ---- layer 0: seed the resident activation with the kernel input ----
    @pl.when(layer == 0)
    def _():
        h_ref[...] = x_ref[...].astype(jnp.float32)

    x = h_ref[...]                                     # (R, D) f32, VMEM-resident

    # ---- unpack this layer's packed parameters (static slices) ----
    vec = vec_ref[0]                                   # (N + 10, D)
    pos  = vec[0:N, :]                                 # (N, D) positional table
    bp   = vec[N + 0:N + 1, :]
    ln0w = vec[N + 1:N + 2, :]
    ln0b = vec[N + 2:N + 3, :]
    bq   = vec[N + 3:N + 4, :]
    bk   = vec[N + 4:N + 5, :]
    bv   = vec[N + 5:N + 6, :]
    bo   = vec[N + 6:N + 7, :]
    ln1w = vec[N + 7:N + 8, :]
    ln1b = vec[N + 8:N + 9, :]
    b2   = vec[N + 9:N + 10, :]

    wide = wide_ref[0]                                 # (D, 5D) = [Wp | Wqkv | Wo]
    wp   = wide[:, 0:D]
    wqkv = wide[:, D:4 * D]
    wo   = wide[:, 4 * D:5 * D]

    w1b1 = mlpin_ref[0]                                # (D + 1, 4D) = [W1 ; b1]
    w1 = w1b1[0:D, :]
    b1 = w1b1[D:D + 1, :]
    w2 = w2_ref[0]                                     # (4D, D)

    # ---- projection + learnable positional embedding ----
    h = jnp.dot(x, wp, preferred_element_type=jnp.float32) + bp          # (R, D)
    h = (h.reshape(B, N, D) + pos[None]).reshape(R, D)

    # ---- ln_0 ----
    h = _layernorm(h, ln0w, ln0b)

    # ---- multi-head self-attention (fused QKV projection) ----
    qkv = jnp.dot(h, wqkv, preferred_element_type=jnp.float32)           # (R, 3D)
    q = (qkv[:, 0:D] + bq).reshape(B, N, D)
    k = (qkv[:, D:2 * D] + bk).reshape(B, N, D)
    v = (qkv[:, 2 * D:3 * D] + bv).reshape(B, N, D)

    scale = 1.0 / math.sqrt(head_dim)
    attn = jnp.zeros((R, D), jnp.float32)
    for hh in range(num_heads):                        # static, unrolled at trace
        sl = slice(hh * head_dim, (hh + 1) * head_dim)
        qh, kh, vh = q[:, :, sl], k[:, :, sl], v[:, :, sl]                # (B, N, hd)
        s = jnp.einsum("bqd,bkd->bqk", qh, kh,
                       preferred_element_type=jnp.float32) * scale       # (B, N, N)
        s = s - jnp.max(s, axis=-1, keepdims=True)
        p = jnp.exp(s)
        p = p * pl.reciprocal(jnp.sum(p, axis=-1, keepdims=True), approx=True)
        oh = jnp.einsum("bqk,bkd->bqd", p, vh,
                        preferred_element_type=jnp.float32)               # (B, N, hd)
        # Fold each head through its own row-slice of Wo and accumulate:
        # sum_h (oh_h @ Wo[h]) == concat(heads) @ Wo   (no concatenate needed)
        attn = attn + jnp.dot(oh.reshape(R, head_dim), wo[sl, :],
                              preferred_element_type=jnp.float32)
    h = h + attn + bo                                   # out-proj bias + residual

    # ---- ln_1 + GELU MLP (exact erf GELU) ----
    h = _layernorm(h, ln1w, ln1b)
    m = jnp.dot(h, w1, preferred_element_type=jnp.float32) + b1          # (R, 4D)
    m = 0.5 * m * (1.0 + lax.erf(m * (1.0 / math.sqrt(2.0))))
    m = jnp.dot(m, w2, preferred_element_type=jnp.float32) + b2          # (R, D)
    h = h + m

    h_ref[...] = h                                      # carry to next layer
    # Output block index is constant across the layer axis -> VMEM-resident;
    # HBM writeback happens once at the end of the grid.
    # TODO(synk): at larger D, present a lane-dense (>=128-wide) output slab.
    out_ref[...] = h.astype(out_ref.dtype)


# ------------------------------ JAX wrapper -------------------------------- #

_VEC_ORDER = ["bp", "ln0w", "ln0b", "bq", "bk", "bv", "bo", "ln1w", "ln1b", "b2"]


def pack_params(layer_params):
    """Pack the 19 per-layer tensors into 4 stacked arrays (leading layer axis)."""
    vecs, wides, mlpins, w2s = [], [], [], []
    for p in layer_params:
        vec = jnp.concatenate([p["pos"]] + [p[n] for n in _VEC_ORDER], axis=0)
        wqkv = jnp.concatenate([p["wq"], p["wk"], p["wv"]], axis=1)
        wide = jnp.concatenate([p["wp"], wqkv, p["wo"]], axis=1)
        mlpin = jnp.concatenate([p["w1"], p["b1"]], axis=0)
        vecs.append(vec)
        wides.append(wide)
        mlpins.append(mlpin)
        w2s.append(p["w2"])
    return (jnp.stack(vecs), jnp.stack(wides), jnp.stack(mlpins), jnp.stack(w2s))


def node_attention(x, layer_params, num_heads):
    B, N, Din = x.shape
    D = layer_params[0]["wp"].shape[1]
    # The torch module applies Linear(input_size, embed_dim) in every layer,
    # so stacking layers requires input_size == embed_dim.
    assert Din == D, "NodeAttention stacking requires input_size == embed_dim"
    head_dim = D // num_heads
    L = len(layer_params)
    R = B * N

    vecs, wides, mlpins, w2s = pack_params(layer_params)
    x2 = x.reshape(R, Din)

    kernel = functools.partial(node_attention_kernel, num_heads, head_dim, N)
    out = pl.pallas_call(
        kernel,
        out_shape=jax.ShapeDtypeStruct((R, D), x.dtype),
        grid_spec=pltpu.PrefetchScalarGridSpec(
            num_scalar_prefetch=0,
            grid=(L,),
            in_specs=[
                pl.BlockSpec((R, Din), lambda l: (0, 0)),            # input rows
                pl.BlockSpec((1, N + 10, D), lambda l: (l, 0, 0)),   # pos + biases/LN
                pl.BlockSpec((1, D, 5 * D), lambda l: (l, 0, 0)),    # [Wp|Wqkv|Wo]
                pl.BlockSpec((1, D + 1, 4 * D), lambda l: (l, 0, 0)),  # [W1;b1]
                pl.BlockSpec((1, 4 * D, D), lambda l: (l, 0, 0)),    # W2
            ],
            out_specs=pl.BlockSpec((R, D), lambda l: (0, 0)),
            scratch_shapes=[pltpu.VMEM((R, D), jnp.float32)],
        ),
        compiler_params=pltpu.CompilerParams(
            # layer axis carries state -> must stay sequential ("arbitrary")
            dimension_semantics=("arbitrary",)),
    )(x2, vecs, wides, mlpins, w2s)
    return out.reshape(B, N, D)


# --------------------------- parameter creation ---------------------------- #

def init_block_params(key, input_size, embed_dim, n_nodes):
    D = embed_dim
    keys = jax.random.split(key, 8)

    def lin(k, din, dout):
        kw, kb = jax.random.split(k)
        lim = 1.0 / math.sqrt(din)
        w = jax.random.uniform(kw, (din, dout), jnp.float32, -lim, lim)
        b = jax.random.uniform(kb, (1, dout), jnp.float32, -lim, lim)
        return w, b

    wp, bp = lin(keys[0], input_size, D)
    wq, bq = lin(keys[1], D, D)
    wk, bk = lin(keys[2], D, D)
    wv, bv = lin(keys[3], D, D)
    wo, bo = lin(keys[4], D, D)
    w1, b1 = lin(keys[5], D, 4 * D)
    w2, b2 = lin(keys[6], 4 * D, D)
    pos = jax.random.normal(keys[7], (n_nodes, D), jnp.float32)   # nn.Embedding table

    return dict(
        pos=pos, wp=wp, bp=bp,
        ln0w=jnp.ones((1, D), jnp.float32), ln0b=jnp.zeros((1, D), jnp.float32),
        wq=wq, bq=bq, wk=wk, bk=bk, wv=wv, bv=bv, wo=wo, bo=bo,
        ln1w=jnp.ones((1, D), jnp.float32), ln1b=jnp.zeros((1, D), jnp.float32),
        w1=w1, b1=b1, w2=w2, b2=b2,
    )


# --------------------------- pure-JAX reference ---------------------------- #

def attention_block_ref(x, p, num_heads):
    D = p["wp"].shape[1]
    hd = D // num_heads

    def ln(z, w, b, eps=1e-5):
        mu = z.mean(-1, keepdims=True)
        var = ((z - mu) ** 2).mean(-1, keepdims=True)
        return (z - mu) / jnp.sqrt(var + eps) * w + b

    h = x @ p["wp"] + p["bp"]
    h = h + p["pos"][None]
    h = ln(h, p["ln0w"], p["ln0b"])

    q = h @ p["wq"] + p["bq"]
    k = h @ p["wk"] + p["bk"]
    v = h @ p["wv"] + p["bv"]
    B, N, _ = h.shape
    qh = q.reshape(B, N, num_heads, hd).transpose(0, 2, 1, 3)
    kh = k.reshape(B, N, num_heads, hd).transpose(0, 2, 1, 3)
    vh = v.reshape(B, N, num_heads, hd).transpose(0, 2, 1, 3)
    s = jnp.einsum("bhqd,bhkd->bhqk", qh, kh) / math.sqrt(hd)
    a = jax.nn.softmax(s, axis=-1)
    o = jnp.einsum("bhqk,bhkd->bhqd", a, vh).transpose(0, 2, 1, 3).reshape(B, N, D)
    o = o @ p["wo"] + p["bo"]
    h = h + o

    h = ln(h, p["ln1w"], p["ln1b"])
    m = h @ p["w1"] + p["b1"]
    m = jax.nn.gelu(m, approximate=False)
    m = m @ p["w2"] + p["b2"]
    return h + m


def node_attention_ref(x, layer_params, num_heads):
    for p in layer_params:
        x = attention_block_ref(x, p, num_heads)
    return x


# ---------------------------------- main ----------------------------------- #

if __name__ == "__main__":
    # NodeAttention(input_size=32, embed_dim=32, num_layers=2, num_heads=2, n_nodes=8)
    # (input_size == embed_dim so layers > 0 compose, as the torch module requires)
    B, N_NODES, INPUT_SIZE, EMBED_DIM = 2, 8, 32, 32
    NUM_HEADS, NUM_LAYERS = 2, 2

    key = jax.random.PRNGKey(0)
    kx, *lkeys = jax.random.split(key, NUM_LAYERS + 1)
    x = jax.random.normal(kx, (B, N_NODES, INPUT_SIZE), jnp.float32)

    layer_params = [
        init_block_params(lkeys[i],
                          INPUT_SIZE if i == 0 else EMBED_DIM,
                          EMBED_DIM, N_NODES)
        for i in range(NUM_LAYERS)
    ]

    y = node_attention(x, layer_params, NUM_HEADS)
    y = jax.block_until_ready(y)

    y_ref = node_attention_ref(x, layer_params, NUM_HEADS)
    assert y.shape == (B, N_NODES, EMBED_DIM)
    assert jnp.allclose(y, y_ref, atol=2e-3, rtol=2e-3), (
        "Pallas kernel output mismatch vs. pure-JAX reference")

    print("KERNEL_OK")
</pallas_src>

<mosaic_0001>
module attributes {stable_mosaic.version = 11 : i64} {
  func.func @node_attention_kernel(%arg0: i32, %arg1: memref<16x32xf32, #tpu.memory_space<vmem>>, %arg2: memref<1x18x32xf32, #tpu.memory_space<vmem>>, %arg3: memref<1x32x160xf32, #tpu.memory_space<vmem>>, %arg4: memref<1x33x128xf32, #tpu.memory_space<vmem>>, %arg5: memref<1x128x32xf32, #tpu.memory_space<vmem>>, %arg6: memref<16x32xf32, #tpu.memory_space<vmem>>, %arg7: memref<16x32xf32, #tpu.memory_space<vmem>>) attributes {dimension_semantics = [#tpu.dimension_semantics<arbitrary>], iteration_bounds = array<i64: 2>, scalar_prefetch = 0 : i64, scratch_operands = 1 : i64, tpu.core_type = #tpu.core_type<tc>, window_params = [{pipeline_mode = #tpu.pipeline_mode<synchronous>, transform_indices = @transform_0, window_bounds = array<i64: 16, 32>}, {transform_indices = @transform_1, window_bounds = array<i64: 1, 18, 32>}, {transform_indices = @transform_2, window_bounds = array<i64: 1, 32, 160>}, {transform_indices = @transform_3, window_bounds = array<i64: 1, 33, 128>}, {transform_indices = @transform_4, window_bounds = array<i64: 1, 128, 32>}, {pipeline_mode = #tpu.pipeline_mode<synchronous>, transform_indices = @transform_5, window_bounds = array<i64: 16, 32>}]} {
    %c0_i32 = arith.constant 0 : i32
    %0 = arith.cmpi eq, %arg0, %c0_i32 : i32
    %1 = arith.extui %0 : i1 to i32
    %c0_i32_0 = arith.constant 0 : i32
    %2 = arith.cmpi ne, %1, %c0_i32_0 : i32
    scf.if %2 {
      %c0_47 = arith.constant 0 : index
      %c0_48 = arith.constant 0 : index
      %152 = vector.load %arg1[%c0_47, %c0_48] : memref<16x32xf32, #tpu.memory_space<vmem>>, vector<16x32xf32>
      %c0_49 = arith.constant 0 : index
      %c0_50 = arith.constant 0 : index
      %153 = vector.load %arg7[%c0_49, %c0_50] : memref<16x32xf32, #tpu.memory_space<vmem>>, vector<16x32xf32>
      tpu.vector_store %arg7[%c0_49, %c0_50], %152 {strides = array<i32>} : memref<16x32xf32, #tpu.memory_space<vmem>>, vector<16x32xf32>,
    } else {
    }
    %c0 = arith.constant 0 : index
    %c0_1 = arith.constant 0 : index
    %3 = vector.load %arg7[%c0, %c0_1] : memref<16x32xf32, #tpu.memory_space<vmem>>, vector<16x32xf32>
    %c0_2 = arith.constant 0 : index
    %c0_3 = arith.constant 0 : index
    %c0_4 = arith.constant 0 : index
    %4 = vector.load %arg2[%c0_2, %c0_3, %c0_4] : memref<1x18x32xf32, #tpu.memory_space<vmem>>, vector<1x18x32xf32>
    %5 = vector.shape_cast %4 : vector<1x18x32xf32> to vector<18x32xf32>
    %6 = vector.extract_strided_slice %5 {offsets = [0, 0], sizes = [8, 32], strides = [1, 1]} : vector<18x32xf32> to vector<8x32xf32>
    %7 = vector.extract_strided_slice %5 {offsets = [8, 0], sizes = [1, 32], strides = [1, 1]} : vector<18x32xf32> to vector<1x32xf32>
    %8 = vector.extract_strided_slice %5 {offsets = [9, 0], sizes = [1, 32], strides = [1, 1]} : vector<18x32xf32> to vector<1x32xf32>
    %9 = vector.extract_strided_slice %5 {offsets = [10, 0], sizes = [1, 32], strides = [1, 1]} : vector<18x32xf32> to vector<1x32xf32>
    %10 = vector.extract_strided_slice %5 {offsets = [11, 0], sizes = [1, 32], strides = [1, 1]} : vector<18x32xf32> to vector<1x32xf32>
    %11 = vector.extract_strided_slice %5 {offsets = [12, 0], sizes = [1, 32], strides = [1, 1]} : vector<18x32xf32> to vector<1x32xf32>
    %12 = vector.extract_strided_slice %5 {offsets = [13, 0], sizes = [1, 32], strides = [1, 1]} : vector<18x32xf32> to vector<1x32xf32>
    %13 = vector.extract_strided_slice %5 {offsets = [14, 0], sizes = [1, 32], strides = [1, 1]} : vector<18x32xf32> to vector<1x32xf32>
    %14 = vector.extract_strided_slice %5 {offsets = [15, 0], sizes = [1, 32], strides = [1, 1]} : vector<18x32xf32> to vector<1x32xf32>
    %15 = vector.extract_strided_slice %5 {offsets = [16, 0], sizes = [1, 32], strides = [1, 1]} : vector<18x32xf32> to vector<1x32xf32>
    %16 = vector.extract_strided_slice %5 {offsets = [17, 0], sizes = [1, 32], strides = [1, 1]} : vector<18x32xf32> to vector<1x32xf32>
    %c0_5 = arith.constant 0 : index
    %c0_6 = arith.constant 0 : index
    %c0_7 = arith.constant 0 : index
    %17 = vector.load %arg3[%c0_5, %c0_6, %c0_7] : memref<1x32x160xf32, #tpu.memory_space<vmem>>, vector<1x32x160xf32>
    %18 = vector.shape_cast %17 : vector<1x32x160xf32> to vector<32x160xf32>
    %19 = vector.extract_strided_slice %18 {offsets = [0, 0], sizes = [32, 32], strides = [1, 1]} : vector<32x160xf32> to vector<32x32xf32>
    %20 = vector.extract_strided_slice %18 {offsets = [0, 32], sizes = [32, 96], strides = [1, 1]} : vector<32x160xf32> to vector<32x96xf32>
    %21 = vector.extract_strided_slice %18 {offsets = [0, 128], sizes = [32, 32], strides = [1, 1]} : vector<32x160xf32> to vector<32x32xf32>
    %c0_8 = arith.constant 0 : index
    %c0_9 = arith.constant 0 : index
    %c0_10 = arith.constant 0 : index
    %22 = vector.load %arg4[%c0_8, %c0_9, %c0_10] : memref<1x33x128xf32, #tpu.memory_space<vmem>>, vector<1x33x128xf32>
    %23 = vector.shape_cast %22 : vector<1x33x128xf32> to vector<33x128xf32>
    %24 = vector.extract_strided_slice %23 {offsets = [0, 0], sizes = [32, 128], strides = [1, 1]} : vector<33x128xf32> to vector<32x128xf32>
    %25 = vector.extract_strided_slice %23 {offsets = [32, 0], sizes = [1, 128], strides = [1, 1]} : vector<33x128xf32> to vector<1x128xf32>
    %c0_11 = arith.constant 0 : index
    %c0_12 = arith.constant 0 : index
    %c0_13 = arith.constant 0 : index
    %26 = vector.load %arg5[%c0_11, %c0_12, %c0_13] : memref<1x128x32xf32, #tpu.memory_space<vmem>>, vector<1x128x32xf32>
    %27 = vector.shape_cast %26 : vector<1x128x32xf32> to vector<128x32xf32>
    %cst = arith.constant dense<0.000000e+00> : vector<16x32xf32>
    %28 = tpu.matmul %3, %19, %cst {dimension_numbers = #tpu.dot_dimension_numbers<[1], [0], [0], [1], [0, 0, 1, 1], [], []>} : vector<16x32xf32>, vector<32x32xf32>, vector<16x32xf32> -> vector<16x32xf32>
    %29 = vector.broadcast %7 : vector<1x32xf32> to vector<16x32xf32>
    %30 = arith.addf %28, %29 : vector<16x32xf32>
    %31 = vector.shape_cast %30 : vector<16x32xf32> to vector<2x8x32xf32>
    %32 = vector.shape_cast %6 : vector<8x32xf32> to vector<1x8x32xf32>
    %33 = vector.broadcast %32 : vector<1x8x32xf32> to vector<2x8x32xf32>
    %34 = arith.addf %31, %33 : vector<2x8x32xf32>
    %35 = vector.shape_cast %34 : vector<2x8x32xf32> to vector<16x32xf32>
    %cst_14 = arith.constant dense<0.000000e+00> : vector<16xf32>
    %36 = vector.multi_reduction <add>, %35, %cst_14 [1] : vector<16x32xf32> to vector<16xf32>
    %37 = vector.shape_cast %36 : vector<16xf32> to vector<16x1xf32>
    %cst_15 = arith.constant 3.200000e+01 : f32
    %38 = vector.broadcast %cst_15 : f32 to vector<16x1xf32>
    %39 = arith.divf %37, %38 : vector<16x1xf32>
    %40 = vector.broadcast %39 : vector<16x1xf32> to vector<16x32xf32>
    %41 = arith.subf %35, %40 : vector<16x32xf32>
    %42 = arith.mulf %41, %41 : vector<16x32xf32>
    %cst_16 = arith.constant dense<0.000000e+00> : vector<16xf32>
    %43 = vector.multi_reduction <add>, %42, %cst_16 [1] : vector<16x32xf32> to vector<16xf32>
    %44 = vector.shape_cast %43 : vector<16xf32> to vector<16x1xf32>
    %cst_17 = arith.constant 3.200000e+01 : f32
    %45 = vector.broadcast %cst_17 : f32 to vector<16x1xf32>
    %46 = arith.divf %44, %45 : vector<16x1xf32>
    %cst_18 = arith.constant 9.99999974E-6 : f32
    %47 = vector.broadcast %cst_18 : f32 to vector<16x1xf32>
    %48 = arith.addf %46, %47 : vector<16x1xf32>
    %49 = math.rsqrt %48 : vector<16x1xf32>
    %50 = vector.broadcast %49 : vector<16x1xf32> to vector<16x32xf32>
    %51 = arith.mulf %41, %50 : vector<16x32xf32>
    %52 = vector.broadcast %8 : vector<1x32xf32> to vector<16x32xf32>
    %53 = arith.mulf %51, %52 : vector<16x32xf32>
    %54 = vector.broadcast %9 : vector<1x32xf32> to vector<16x32xf32>
    %55 = arith.addf %53, %54 : vector<16x32xf32>
    %cst_19 = arith.constant dense<0.000000e+00> : vector<16x96xf32>
    %56 = tpu.matmul %55, %20, %cst_19 {dimension_numbers = #tpu.dot_dimension_numbers<[1], [0], [0], [1], [0, 0, 1, 1], [], []>} : vector<16x32xf32>, vector<32x96xf32>, vector<16x96xf32> -> vector<16x96xf32>
    %57 = vector.extract_strided_slice %56 {offsets = [0, 0], sizes = [16, 32], strides = [1, 1]} : vector<16x96xf32> to vector<16x32xf32>
    %58 = vector.broadcast %10 : vector<1x32xf32> to vector<16x32xf32>
    %59 = arith.addf %57, %58 : vector<16x32xf32>
    %60 = vector.shape_cast %59 : vector<16x32xf32> to vector<2x8x32xf32>
    %61 = vector.extract_strided_slice %56 {offsets = [0, 32], sizes = [16, 32], strides = [1, 1]} : vector<16x96xf32> to vector<16x32xf32>
    %62 = vector.broadcast %11 : vector<1x32xf32> to vector<16x32xf32>
    %63 = arith.addf %61, %62 : vector<16x32xf32>
    %64 = vector.shape_cast %63 : vector<16x32xf32> to vector<2x8x32xf32>
    %65 = vector.extract_strided_slice %56 {offsets = [0, 64], sizes = [16, 32], strides = [1, 1]} : vector<16x96xf32> to vector<16x32xf32>
    %66 = vector.broadcast %12 : vector<1x32xf32> to vector<16x32xf32>
    %67 = arith.addf %65, %66 : vector<16x32xf32>
    %68 = vector.shape_cast %67 : vector<16x32xf32> to vector<2x8x32xf32>
    %cst_20 = arith.constant 0.000000e+00 : f32
    %69 = vector.broadcast %cst_20 : f32 to vector<16x32xf32>
    %70 = vector.extract_strided_slice %60 {offsets = [0, 0, 0], sizes = [2, 8, 16], strides = [1, 1, 1]} : vector<2x8x32xf32> to vector<2x8x16xf32>
    %71 = vector.extract_strided_slice %64 {offsets = [0, 0, 0], sizes = [2, 8, 16], strides = [1, 1, 1]} : vector<2x8x32xf32> to vector<2x8x16xf32>
    %72 = vector.extract_strided_slice %68 {offsets = [0, 0, 0], sizes = [2, 8, 16], strides = [1, 1, 1]} : vector<2x8x32xf32> to vector<2x8x16xf32>
    "tpu.trace_start"() <{level = 10 : i32, message = "bqd,bkd->bqk"}> : () -> ()
    %cst_21 = arith.constant dense<0.000000e+00> : vector<2x8x8xf32>
    %73 = tpu.matmul %70, %71, %cst_21 {dimension_numbers = #tpu.dot_dimension_numbers<[2], [2], [1], [1], [0, 0, 0, 1, 1, 1], [0], [0]>} : vector<2x8x16xf32>, vector<2x8x16xf32>, vector<2x8x8xf32> -> vector<2x8x8xf32>
    "tpu.trace_stop"() : () -> ()
    %cst_22 = arith.constant 2.500000e-01 : f32
    %74 = vector.broadcast %cst_22 : f32 to vector<2x8x8xf32>
    %75 = arith.mulf %73, %74 : vector<2x8x8xf32>
    %cst_23 = arith.constant dense<0xFF800000> : vector<2x8xf32>
    %76 = vector.multi_reduction <maximumf>, %75, %cst_23 [2] : vector<2x8x8xf32> to vector<2x8xf32>
    %77 = vector.shape_cast %76 : vector<2x8xf32> to vector<2x8x1xf32>
    %78 = vector.broadcast %77 : vector<2x8x1xf32> to vector<2x8x8xf32>
    %79 = arith.subf %75, %78 : vector<2x8x8xf32>
    %80 = math.exp %79 : vector<2x8x8xf32>
    %cst_24 = arith.constant dense<0.000000e+00> : vector<2x8xf32>
    %81 = vector.multi_reduction <add>, %80, %cst_24 [2] : vector<2x8x8xf32> to vector<2x8xf32>
    %82 = vector.shape_cast %81 : vector<2x8xf32> to vector<2x8x1xf32>
    %83 = tpu.reciprocal %82 {approx = true} : vector<2x8x1xf32> -> vector<2x8x1xf32>
    %84 = vector.broadcast %83 : vector<2x8x1xf32> to vector<2x8x8xf32>
    %85 = arith.mulf %80, %84 : vector<2x8x8xf32>
    "tpu.trace_start"() <{level = 10 : i32, message = "bqk,bkd->bqd"}> : () -> ()
    %cst_25 = arith.constant dense<0.000000e+00> : vector<2x8x16xf32>
    %86 = tpu.matmul %85, %72, %cst_25 {dimension_numbers = #tpu.dot_dimension_numbers<[2], [1], [1], [2], [0, 0, 0, 1, 1, 2], [0], [0]>} : vector<2x8x8xf32>, vector<2x8x16xf32>, vector<2x8x16xf32> -> vector<2x8x16xf32>
    "tpu.trace_stop"() : () -> ()
    %87 = vector.shape_cast %86 : vector<2x8x16xf32> to vector<16x16xf32>
    %88 = vector.extract_strided_slice %21 {offsets = [0, 0], sizes = [16, 32], strides = [1, 1]} : vector<32x32xf32> to vector<16x32xf32>
    %cst_26 = arith.constant dense<0.000000e+00> : vector<16x32xf32>
    %89 = tpu.matmul %87, %88, %cst_26 {dimension_numbers = #tpu.dot_dimension_numbers<[1], [0], [0], [1], [0, 0, 1, 1], [], []>} : vector<16x16xf32>, vector<16x32xf32>, vector<16x32xf32> -> vector<16x32xf32>
    %90 = arith.addf %69, %89 : vector<16x32xf32>
    %91 = vector.extract_strided_slice %60 {offsets = [0, 0, 16], sizes = [2, 8, 16], strides = [1, 1, 1]} : vector<2x8x32xf32> to vector<2x8x16xf32>
    %92 = vector.extract_strided_slice %64 {offsets = [0, 0, 16], sizes = [2, 8, 16], strides = [1, 1, 1]} : vector<2x8x32xf32> to vector<2x8x16xf32>
    %93 = vector.extract_strided_slice %68 {offsets = [0, 0, 16], sizes = [2, 8, 16], strides = [1, 1, 1]} : vector<2x8x32xf32> to vector<2x8x16xf32>
    "tpu.trace_start"() <{level = 10 : i32, message = "bqd,bkd->bqk"}> : () -> ()
    %cst_27 = arith.constant dense<0.000000e+00> : vector<2x8x8xf32>
    %94 = tpu.matmul %91, %92, %cst_27 {dimension_numbers = #tpu.dot_dimension_numbers<[2], [2], [1], [1], [0, 0, 0, 1, 1, 1], [0], [0]>} : vector<2x8x16xf32>, vector<2x8x16xf32>, vector<2x8x8xf32> -> vector<2x8x8xf32>
    "tpu.trace_stop"() : () -> ()
    %cst_28 = arith.constant 2.500000e-01 : f32
    %95 = vector.broadcast %cst_28 : f32 to vector<2x8x8xf32>
    %96 = arith.mulf %94, %95 : vector<2x8x8xf32>
    %cst_29 = arith.constant dense<0xFF800000> : vector<2x8xf32>
    %97 = vector.multi_reduction <maximumf>, %96, %cst_29 [2] : vector<2x8x8xf32> to vector<2x8xf32>
    %98 = vector.shape_cast %97 : vector<2x8xf32> to vector<2x8x1xf32>
    %99 = vector.broadcast %98 : vector<2x8x1xf32> to vector<2x8x8xf32>
    %100 = arith.subf %96, %99 : vector<2x8x8xf32>
    %101 = math.exp %100 : vector<2x8x8xf32>
    %cst_30 = arith.constant dense<0.000000e+00> : vector<2x8xf32>
    %102 = vector.multi_reduction <add>, %101, %cst_30 [2] : vector<2x8x8xf32> to vector<2x8xf32>
    %103 = vector.shape_cast %102 : vector<2x8xf32> to vector<2x8x1xf32>
    %104 = tpu.reciprocal %103 {approx = true} : vector<2x8x1xf32> -> vector<2x8x1xf32>
    %105 = vector.broadcast %104 : vector<2x8x1xf32> to vector<2x8x8xf32>
    %106 = arith.mulf %101, %105 : vector<2x8x8xf32>
    "tpu.trace_start"() <{level = 10 : i32, message = "bqk,bkd->bqd"}> : () -> ()
    %cst_31 = arith.constant dense<0.000000e+00> : vector<2x8x16xf32>
    %107 = tpu.matmul %106, %93, %cst_31 {dimension_numbers = #tpu.dot_dimension_numbers<[2], [1], [1], [2], [0, 0, 0, 1, 1, 2], [0], [0]>} : vector<2x8x8xf32>, vector<2x8x16xf32>, vector<2x8x16xf32> -> vector<2x8x16xf32>
    "tpu.trace_stop"() : () -> ()
    %108 = vector.shape_cast %107 : vector<2x8x16xf32> to vector<16x16xf32>
    %109 = vector.extract_strided_slice %21 {offsets = [16, 0], sizes = [16, 32], strides = [1, 1]} : vector<32x32xf32> to vector<16x32xf32>
    %cst_32 = arith.constant dense<0.000000e+00> : vector<16x32xf32>
    %110 = tpu.matmul %108, %109, %cst_32 {dimension_numbers = #tpu.dot_dimension_numbers<[1], [0], [0], [1], [0, 0, 1, 1], [], []>} : vector<16x16xf32>, vector<16x32xf32>, vector<16x32xf32> -> vector<16x32xf32>
    %111 = arith.addf %90, %110 : vector<16x32xf32>
    %112 = arith.addf %55, %111 : vector<16x32xf32>
    %113 = vector.broadcast %13 : vector<1x32xf32> to vector<16x32xf32>
    %114 = arith.addf %112, %113 : vector<16x32xf32>
    %cst_33 = arith.constant dense<0.000000e+00> : vector<16xf32>
    %115 = vector.multi_reduction <add>, %114, %cst_33 [1] : vector<16x32xf32> to vector<16xf32>
    %116 = vector.shape_cast %115 : vector<16xf32> to vector<16x1xf32>
    %cst_34 = arith.constant 3.200000e+01 : f32
    %117 = vector.broadcast %cst_34 : f32 to vector<16x1xf32>
    %118 = arith.divf %116, %117 : vector<16x1xf32>
    %119 = vector.broadcast %118 : vector<16x1xf32> to vector<16x32xf32>
    %120 = arith.subf %114, %119 : vector<16x32xf32>
    %121 = arith.mulf %120, %120 : vector<16x32xf32>
    %cst_35 = arith.constant dense<0.000000e+00> : vector<16xf32>
    %122 = vector.multi_reduction <add>, %121, %cst_35 [1] : vector<16x32xf32> to vector<16xf32>
    %123 = vector.shape_cast %122 : vector<16xf32> to vector<16x1xf32>
    %cst_36 = arith.constant 3.200000e+01 : f32
    %124 = vector.broadcast %cst_36 : f32 to vector<16x1xf32>
    %125 = arith.divf %123, %124 : vector<16x1xf32>
    %cst_37 = arith.constant 9.99999974E-6 : f32
    %126 = vector.broadcast %cst_37 : f32 to vector<16x1xf32>
    %127 = arith.addf %125, %126 : vector<16x1xf32>
    %128 = math.rsqrt %127 : vector<16x1xf32>
    %129 = vector.broadcast %128 : vector<16x1xf32> to vector<16x32xf32>
    %130 = arith.mulf %120, %129 : vector<16x32xf32>
    %131 = vector.broadcast %14 : vector<1x32xf32> to vector<16x32xf32>
    %132 = arith.mulf %130, %131 : vector<16x32xf32>
    %133 = vector.broadcast %15 : vector<1x32xf32> to vector<16x32xf32>
    %134 = arith.addf %132, %133 : vector<16x32xf32>
    %cst_38 = arith.constant dense<0.000000e+00> : vector<16x128xf32>
    %135 = tpu.matmul %134, %24, %cst_38 {dimension_numbers = #tpu.dot_dimension_numbers<[1], [0], [0], [1], [0, 0, 1, 1], [], []>} : vector<16x32xf32>, vector<32x128xf32>, vector<16x128xf32> -> vector<16x128xf32>
    %136 = vector.broadcast %25 : vector<1x128xf32> to vector<16x128xf32>
    %137 = arith.addf %135, %136 : vector<16x128xf32>
    %cst_39 = arith.constant 5.000000e-01 : f32
    %138 = vector.broadcast %cst_39 : f32 to vector<16x128xf32>
    %139 = arith.mulf %138, %137 : vector<16x128xf32>
    %cst_40 = arith.constant 0.707106769 : f32
    %140 = vector.broadcast %cst_40 : f32 to vector<16x128xf32>
    %141 = arith.mulf %137, %140 : vector<16x128xf32>
    %142 = math.erf %141 : vector<16x128xf32>
    %cst_41 = arith.constant 1.000000e+00 : f32
    %143 = vector.broadcast %cst_41 : f32 to vector<16x128xf32>
    %144 = arith.addf %143, %142 : vector<16x128xf32>
    %145 = arith.mulf %139, %144 : vector<16x128xf32>
    %cst_42 = arith.constant dense<0.000000e+00> : vector<16x32xf32>
    %146 = tpu.matmul %145, %27, %cst_42 {dimension_numbers = #tpu.dot_dimension_numbers<[1], [0], [0], [1], [0, 0, 1, 1], [], []>} : vector<16x128xf32>, vector<128x32xf32>, vector<16x32xf32> -> vector<16x32xf32>
    %147 = vector.broadcast %16 : vector<1x32xf32> to vector<16x32xf32>
    %148 = arith.addf %146, %147 : vector<16x32xf32>
    %149 = arith.addf %134, %148 : vector<16x32xf32>
    %c0_43 = arith.constant 0 : index
    %c0_44 = arith.constant 0 : index
    %150 = vector.load %arg7[%c0_43, %c0_44] : memref<16x32xf32, #tpu.memory_space<vmem>>, vector<16x32xf32>
    tpu.vector_store %arg7[%c0_43, %c0_44], %149 {strides = array<i32>} : memref<16x32xf32, #tpu.memory_space<vmem>>, vector<16x32xf32>,
    %c0_45 = arith.constant 0 : index
    %c0_46 = arith.constant 0 : index
    %151 = vector.load %arg6[%c0_45, %c0_46] : memref<16x32xf32, #tpu.memory_space<vmem>>, vector<16x32xf32>
    tpu.vector_store %arg6[%c0_45, %c0_46], %149 {strides = array<i32>} : memref<16x32xf32, #tpu.memory_space<vmem>>, vector<16x32xf32>,
    return
  }
  func.func @transform_0(%arg0: i32) -> (i32, i32) {
    %c0_i32 = arith.constant 0 : i32
    %c0_i32_0 = arith.constant 0 : i32
    %c0_i32_1 = arith.constant 0 : i32
    return %c0_i32, %c0_i32_0 : i32, i32
  }
  func.func @transform_1(%arg0: i32) -> (i32, i32, i32) {
    %c0_i32 = arith.constant 0 : i32
    %c0_i32_0 = arith.constant 0 : i32
    %c0_i32_1 = arith.constant 0 : i32
    return %arg0, %c0_i32, %c0_i32_0 : i32, i32, i32
  }
  func.func @transform_2(%arg0: i32) -> (i32, i32, i32) {
    %c0_i32 = arith.constant 0 : i32
    %c0_i32_0 = arith.constant 0 : i32
    %c0_i32_1 = arith.constant 0 : i32
    return %arg0, %c0_i32, %c0_i32_0 : i32, i32, i32
  }
  func.func @transform_3(%arg0: i32) -> (i32, i32, i32) {
    %c0_i32 = arith.constant 0 : i32
    %c0_i32_0 = arith.constant 0 : i32
    %c0_i32_1 = arith.constant 0 : i32
    return %arg0, %c0_i32, %c0_i32_0 : i32, i32, i32
  }
  func.func @transform_4(%arg0: i32) -> (i32, i32, i32) {
    %c0_i32 = arith.constant 0 : i32
    %c0_i32_0 = arith.constant 0 : i32
    %c0_i32_1 = arith.constant 0 : i32
    return %arg0, %c0_i32, %c0_i32_0 : i32, i32, i32
  }
  func.func @transform_5(%arg0: i32) -> (i32, i32) {
    %c0_i32 = arith.constant 0 : i32
    %c0_i32_0 = arith.constant 0 : i32
    %c0_i32_1 = arith.constant 0 : i32
    return %c0_i32, %c0_i32_0 : i32, i32
  }
}

</mosaic_0001>

<bundles_post_ra>
// kernel: tpu_custom_call.1
= control target key start
LH: loop header
LB: loop body
LE: loop exit
PB: predicated region body
PF: predicated region fallthrough
CT: control target
= control target key end

     0   :  { %10 = vsyncpa [#allocation4], 0  ;;  %s2136_s18 = smov 0   ;;  %s2347_s0 = inlined_call_operand.vmem [shape: f32[16,32], index: 0, kind: input, shape index: {}]   ;;  %s2348_s1 = inlined_call_operand.vmem [shape: f32[2,18,32], index: 1, kind: input, shape index: {}]   ;;  %s2349_s2 = inlined_call_operand.vmem [shape: f32[2,32,160], index: 2, kind: input, shape index: {}]   ;;  %s2350_s3 = inlined_call_operand.vmem [shape: f32[2,33,128], index: 3, kind: input, shape index: {}]   ;;  %s2351_s4 = inlined_call_operand.vmem [shape: f32[2,128,32], index: 4, kind: input, shape index: {}]   ;;  %s2352_s5 = inlined_call_operand.hbm [shape: f32[16,32], index: 5, kind: output, shape index: {}]  }
   0x1 LB: > { %s2142_s19 = sadd.s32 4294967295, %s2093_s18   ;;  %p1707_p0 = scmp.ge.s32.totalorder %s2093_s18, 1  ;;  %s2093_s18 = sphi %s2136_s18, %s16_s18  }
   0x2   : > { %p213_p1 = scmp.lt.s32.totalorder %s2093_s18, 3 }
   0x4   : > { %p214_p2 = pnand %p1707_p0, %p213_p1 }
   0x5   : > { %p251_p3 = scmp.lt.s32.totalorder (!%p214_p2), %s2142_s19, 1  ;;  %p1714_p4 = scmp.ne.s32.totalorder (!%p214_p2), %s2142_s19, 0 }
   0x6   : > { %217 = sbr.rel (%p214_p2) target bundleno = 3222 (0xc96), region = 40 }
   0xd   : > { %s252_s20 = scalar_select %p251_p3, %s2142_s19, 1 }
   0xe   : > { %274 = sbr.rel (%p1714_p4) target bundleno = 21 (0x15), region = 44  ;;  %v275_v0 = vld [vmem:[%s2347_s0] sm:$0xff] (!%p1714_p4)  ;;  %vm277_vm0 = vcmask (!%p1714_p4), 261120   ;;  %v276_v1 = vld [vmem:[%s2347_s0 + $0x8] sm:$0xff] (!%p1714_p4) }
   0xf   : > { %s1992_s21 = smul.u32 24, %s252_s20  ;;  %s1742_s22 = sshll.u32 %s252_s20, 6  ;;  %278 = vst.msk [vmem:[#allocation2] sm:$0xff] (!%p1714_p4), %vm277_vm0, %v275_v0  ;;  %279 = vst.msk [vmem:[#allocation2 + $0x8] sm:$0xff] (!%p1714_p4), %vm277_vm0, %v276_v1 }
  0x10   : > { %s2151_s25 = scalar_lea.vmem %s2349_s2, %s1742_s22  ;;  %s1993_s26 = smul.u32 40, %s252_s20 }
  0x11   : > { %s2156_s29 = scalar_lea.vmem %s2348_s1, %s1992_s21  ;;  %s1743_s30 = sshll.u32 %s252_s20, 7 }
  0x12   : > { %s2161_s8 = scalar_lea.vmem %s2350_s3, %s1993_s26  ;;  %s2166_s11 = scalar_lea.vmem %s2351_s4, %s1743_s30 }
  0x15 PF: > { %v285_v2 = vld [vmem:[%s2151_s25] sm:$0xff]  ;;  %v287_v3 = vld [vmem:[%s2151_s25 + $0x10] sm:$0xff]  ;;  %vm318_vm1 = vcmask 261120   ;;  %v314_v11 = vlaneseq  ;;  %v2185_v14 = vld [vmem:[%s2156_s29 + $0x8] sm:$0xff]  ;;  %s2095_s16 = smov 96   ;;  %s2096_s17 = smov 32  }
  0x16   : > { %v289_v4 = vld [vmem:[%s2151_s25 + $0x20] sm:$0xff]  ;;  %v2019_v5 = vpack.i.bf16 %v287_v3, %v285_v2  ;;  %v1926_v6 = vpack.c.bf16 %v287_v3, %v285_v2  ;;  %v291_v7 = vld [vmem:[%s2151_s25 + $0x30] sm:$0xff]  ;;  %v281_v10 = vld [vmem:[#allocation2 + $0x8] sm:$0xff]  ;;  %v2097_v0 = vmov 0.0   ;;  %vm2098_vm2 = vmmov 0   ;;  %s2099_s20 = smov 64  }
  0x17   : > { %v280_v8 = vld [vmem:[#allocation2] sm:$0xff]  ;;  %v1930_v9 = vpack.c.bf16 %v291_v7, %v289_v4  ;;  %v2181_v12 = vshrl.u32 %v314_v11, 7  ;;  %v2024_v35 = vpack.i.bf16 %v291_v7, %v289_v4  ;;  %1846 = vmatprep.subr.mxu0 %v2097_v0  ;;  %1848 = vmatprep.mubr.msk.f32.mxu0 %vm2098_vm2, %v2097_v0  ;;  %vm567_vm3 = vcmask 130048   ;;  %s2100_s21 = smov 80   ;;  %s2101_s22 = smov 112  }
  0x18   : > { %1812 = vmatprep.mubr.msk.f32.mxu1 %vm318_vm1, %v280_v8  ;;  %1927 = vmatprep.subr.bf16.mxu1 %v1926_v6  ;;  %v282_v18 = vld [vmem:[%s2156_s29] sm:$0xff]  ;;  %vm723_vm4 = vcmask 64512   ;;  %s2102_s23 = smov 48   ;;  %s2103_s24 = smov [#allocation3]  }
  0x19   : > { %1929 = vmatpush3.bf16.msra.mxu1 %v1926_v6  ;;  %v316_v13 = vsub.s32 0, %v2181_v12  ;;  %v546_v40 = vsub.s32 4, %v2181_v12  ;;  %v431_v52 = vsub.s32 1, %v2181_v12  ;;  %v437_v56 = vsub.s32 2, %v2181_v12  ;;  %p1998_p5 = scmp.eq.s32.totalorder %s2142_s19, 1 }
  0x1a   : > { %1931 = vmatprep.subr.bf16.mxu1 %v1930_v9  ;;  %v540_v6 = vsub.s32 3, %v2181_v12 }
  0x1b   : > { %v317_v15 = vrot.slane %v2185_v14, %v316_v13  ;;  %v547_v41 = vrot.slane %v2185_v14, %v546_v40  ;;  %v432_v55 = vrot.slane %v2185_v14, %v431_v52  ;;  %v438_v60 = vrot.slane %v2185_v14, %v437_v56 }
  0x1c   : > { %v541_v7 = vrot.slane %v2185_v14, %v540_v6 }
  0x1d   : > { %1933 = vmatpush3.bf16.msra.mxu1 %v1930_v9 }
  0x20   : > { %1813 = vmatmul.mubr.msk.f32.vlgmr.msra.gmra.mrb[0].mxu1 %vm318_vm1, %v281_v10 }
  0xf3   : > { %v1814_v16 = vpop.f32.mrb[0].mxu1 }
  0xf4   : > { %v391_v17 = vpop.f32.mrb[1].mxu1  ;;  %v397_v19 = vadd.f32 %v1814_v16, %v317_v15 }
  0xf5   : > { %v392_v20 = vadd.f32 %v391_v17, %v317_v15 }
  0xf6   : > { %v401_v23 = vadd.f32 %v397_v19, %v282_v18 }
  0xf7   : > { %v400_v21 = vadd.f32 %v392_v20, %v282_v18 }
  0xf8   : > { %v405_v24 = vsel %vm318_vm1, %v401_v23, 0.0 }
  0xf9   : > { %v402_v22 = vsel %vm318_vm1, %v400_v21, 0.0 }
  0xfa   : > { %403 = vadd.xlane.f32.xlu0 %v402_v22 }
  0xfe   : > { %406 = vadd.xlane.f32.xlu0 %v405_v24 }
 0x114   : > { %2020 = vrot.lane.b32.xlu0 %v2019_v5, %s2095_s16 }
 0x187   : > { %v404_v25 = vpop.xlane.xlu0 %403 }
 0x188   : > { %v409_v26 = vmul.f32 0.03125, %v404_v25 }
 0x18a   : > { %v411_v29 = vsub.f32 %v400_v21, %v409_v26 }
 0x18b   : > { %v407_v27 = vpop.xlane.xlu0 %406 }
 0x18c   : > { %v410_v28 = vmul.f32 0.03125, %v407_v27  ;;  %v413_v33 = vmul.f32 %v411_v29, %v411_v29 }
 0x18e   : > { %v412_v30 = vsub.f32 %v401_v23, %v410_v28  ;;  %v415_v34 = vsel %vm318_vm1, %v413_v33, 0.0  ;;  %v556_v23 = vsub.s32 5, %v2181_v12 }
 0x18f   : > { %v2021_v36 = vpop.permute.xlu0 %2020 }
 0x190   : > { %v414_v31 = vmul.f32 %v412_v30, %v412_v30  ;;  %v2023_v37 = vunpack.i.h.bf16 %v2021_v36  ;;  %v2022_v38 = vunpack.i.l.bf16 %v2021_v36  ;;  %v557_v24 = vrot.slane %v2185_v14, %v556_v23  ;;  %v292_v23 = vld [vmem:[%s2151_s25 + $0x38] sm:$0xff] }
 0x192   : > { %v418_v32 = vsel %vm318_vm1, %v414_v31, 0.0  ;;  %v1934_v39 = vpack.c.bf16 %v2023_v37, %v2022_v38 }
 0x193   : > { %419 = vadd.xlane.f32.xlu1 %v418_v32 }
 0x194   : > { %1935 = vmatprep.subr.bf16.mxu1 %v1934_v39 }
 0x195   : > { %1937 = vmatpush3.bf16.msra.mxu1 %v1934_v39 }
 0x197   : > { %416 = vadd.xlane.f32.xlu1 %v415_v34 }
 0x1a8   : > { %2025 = vrot.lane.b32.xlu1 %v2024_v35, %s2095_s16 }
 0x1ac   : > { %549 = vrot.lane.b32.xlu1 %v547_v41, %s2096_s17 }
 0x220   : > { %v420_v42 = vpop.xlane.xlu1 %419 }
 0x221   : > { %v422_v43 = vmul.f32 0.03125, %v420_v42 }
 0x223   : > { %v424_v44 = vadd.f32 1e-05, %v422_v43 }
 0x224   : > { %v417_v45 = vpop.xlane.xlu1 %416 }
 0x225   : > { %2029 = vrsqrt.f32 %v424_v44  ;;  %v421_v46 = vmul.f32 0.03125, %v417_v45 }
 0x227   : > { %v423_v47 = vadd.f32 1e-05, %v421_v46 }
 0x228   : > { %v2026_v48 = vpop.permute.xlu1 %2025 }
 0x229   : > { %2031 = vrsqrt.f32 %v423_v47  ;;  %v2028_v49 = vunpack.i.h.bf16 %v2026_v48  ;;  %v2027_v50 = vunpack.i.l.bf16 %v2026_v48 }
 0x22b   : > { %v1938_v51 = vpack.c.bf16 %v2028_v49, %v2027_v50 }
 0x22c   : > { %v550_v1 = vpop.permute.xlu1 %549 }
 0x22d   : > { %1939 = vmatprep.subr.bf16.mxu1 %v1938_v51 }
 0x22e   : > { %1941 = vmatpush3.bf16.msra.mxu1 %v1938_v51 }
 0x22f   : > { %v2030_v53 = vpop.eup %2029  ;;  %1826 = vmatprep.subr.mxu1 %v2097_v0 }
 0x230   : > { %v428_v54 = vmul.f32 %v2030_v53, %v412_v30 }
 0x232   : > { %v434_v59 = vmul.f32 %v432_v55, %v428_v54 }
 0x233   : > { %v2032_v57 = vpop.eup %2031 }
 0x234   : > { %v427_v58 = vmul.f32 %v2032_v57, %v411_v29  ;;  %v2207_v63 = vadd.f32 %v438_v60, %v434_v59 }
 0x236   : > { %v433_v61 = vmul.f32 %v432_v55, %v427_v58 }
 0x238   : > { %v2205_v62 = vadd.f32 %v438_v60, %v433_v61 }
 0x23a   : > { %1823 = vmatprep.mubr.msk.f32.mxu1 %vm318_vm1, %v2205_v62 }
 0x23b   : > { %1824 = vmatmul.mubr.msk.f32.vlgmr.msra.gmra.mrb[2].mxu1 %vm318_vm1, %v2207_v63 }
 0x23c   : > { %1828 = vmatprep.mubr.msk.f32.mxu1 %vm2098_vm2, %v2097_v0 }
 0x30e   : > { %v1825_v2 = vpop.f32.mrb[2].mxu1 }
 0x30f   : > { %v553_v3 = vadd.f32 %v1825_v2, %v550_v1  ;;  %v529_v4 = vpop.f32.mrb[3].mxu1  ;;  %v543_v11 = vadd.f32 %v1825_v2, %v541_v7 }
 0x310   : > { %v552_v5 = vadd.f32 %v550_v1, %v529_v4  ;;  %v542_v9 = vadd.f32 %v541_v7, %v529_v4 }
 0x311   : > { %644 = vrot.lane.b32.xlu0 %v553_v3, %s2095_s16 }
 0x312   : > { %565 = vrot.lane.b32.xlu1 %v552_v5, %s2095_s16 }
 0x383   : > { %v645_v10 = vpop.permute.xlu0 %644 }
 0x384   : > { %v566_v8 = vpop.permute.xlu1 %565 }
 0x385   : > { %1827 = vmatpush3.xpose.msk.msra.mxu1 %vm567_vm3, %v566_v8 }
 0x386   : > { %1831 = vmatprep.subr.mxu1 %v2097_v0 }
 0x388   : > { %1829 = vmatmul.mubr.msk.f32.vlgmr.msra.gmra.mrb[4].mxu1 %vm567_vm3, %v542_v9 }
 0x389   : > { %1832 = vmatpush3.xpose.msk.msra.mxu1 %vm567_vm3, %v645_v10  ;;  %1833 = vmatprep.mubr.msk.f32.mxu1 %vm2098_vm2, %v2097_v0 }
 0x38a   : > { %1836 = vmatprep.subr.mxu1 %v2097_v0 }
 0x38c   : > { %1834 = vmatmul.mubr.msk.f32.vlgmr.msra.gmra.mrb[6].mxu1 %vm567_vm3, %v543_v11 }
 0x38d   : > { %1838 = vmatprep.mubr.msk.f32.mxu1 %vm2098_vm2, %v2097_v0 }
 0x45b   : > { %v639_v15 = vpop.f32.mrb[4].mxu1 }
 0x45c   : > { %v721_v16 = vmul.f32 0.25, %v639_v15  ;;  %v1830_v17 = vpop.f32.mrb[5].mxu1 }
 0x45e   : > { %v724_v18 = vsel %vm723_vm4, %v721_v16, -inf }
 0x45f   : > { %725 = vmax.xlane.f32.xlu1 %v724_v18  ;;  %v717_v19 = vpop.f32.mrb[6].mxu1 }
 0x460   : > { %v722_v20 = vmul.f32 0.25, %v717_v19  ;;  %v1835_v21 = vpop.f32.mrb[7].mxu1 }
 0x462   : > { %v727_v22 = vsel %vm723_vm4, %v722_v20, -inf }
 0x463   : > { %728 = vmax.xlane.f32.xlu0 %v727_v22  ;;  %v290_v22 = vld [vmem:[%s2151_s25 + $0x28] sm:$0xff] }
 0x479   : > { %559 = vrot.lane.b32.xlu0 %v557_v24, %s2099_s20  ;;  %v1942_v24 = vpack.c.bf16 %v292_v23, %v290_v22 }
 0x4ec   : > { %v726_v29 = vpop.xlane.xlu1 %725 }
 0x4ed   : > { %v730_v30 = vsub.f32 %v721_v16, %v726_v29 }
 0x4ef   : > { %v732_v31 = vmul.f32 1.442695, %v730_v30 }
 0x4f0   : > { %v729_v25 = vpop.xlane.xlu0 %728 }
 0x4f1   : > { %v731_v32 = vsub.f32 %v722_v20, %v729_v25  ;;  %2033 = vpow2.f32 %v732_v31  ;;  %v286_v25 = vld [vmem:[%s2151_s25 + $0x8] sm:$0xff] }
 0x4f3   : > { %v734_v33 = vmul.f32 1.442695, %v731_v32  ;;  %v1398_v32 = vsub.s32 6, %v2181_v12 }
 0x4f4   : > { %v560_v26 = vpop.permute.xlu0 %559 }
 0x4f5   : > { %v2237_v27 = vadd.f32 %v560_v26, %v529_v4  ;;  %v2239_v28 = vadd.f32 %v1825_v2, %v560_v26  ;;  %2035 = vpow2.f32 %v734_v33  ;;  %v288_v26 = vld [vmem:[%s2151_s25 + $0x18] sm:$0xff]  ;;  %v1399_v33 = vrot.slane %v2185_v14, %v1398_v32  ;;  %v310_v32 = vld [vmem:[%s2166_s11 + $0x60] sm:$0xff]  ;;  %s1626_s25 = sshll.u32 %s2103_s24, 4  ;;  %s1627_s25 = int_to_ptr.vmem [resolvable:$true] %s1626_s25 }
 0x4f6   : > { %s2057_s26 = scalar_lea.vmem %s1627_s25, 256  ;;  %p2064_p9 = scmp.lt.s32.totalorder %s1627_s25, %s1627_s25 }
 0x4f7   : > { %824 = vrot.lane.b32.xlu0 %v2239_v28, %s2099_s20  ;;  %747 = vrot.lane.b32.xlu1 %v2237_v27, %s2099_s20  ;;  %p2058_p6 = scmp.ne.s32.totalorder %s1627_s25, %s2057_s26  ;;  %p2065_p10 = scmp.lt.s32.totalorder %s2057_s26, %s2057_s26 }
 0x4f9   : > { %p2059_p7 = pnand %p2058_p6, %p1998_p5  ;;  %p2066_p11 = por %p2065_p10, %p2064_p9 }
 0x4fb   : > { %902 = vrot.lane.b32.xlu0 %v552_v5, %s2100_s21  ;;  %980 = vrot.lane.b32.xlu1 %v553_v3, %s2100_s21  ;;  %v2034_v34 = vpop.eup %2033  ;;  %p2060_p8 = pneg %p2059_p7 }
 0x4fc   : > { %v736_v35 = vsel %vm723_vm4, %v2034_v34, 0.0 }
 0x4fd   : > { %p2067_p12 = pnand %p2066_p11, %p2060_p8 }
 0x4ff   : > { %900 = vrot.lane.b32.xlu0 %v542_v9, %s2101_s22  ;;  %v2036_v36 = vpop.eup %2035 }
 0x500   : > { %v739_v37 = vsel %vm723_vm4, %v2036_v36, 0.0 }
 0x51f   : > { %737 = vadd.xlane.f32.xlu1 %v736_v35 }
 0x523   : > { %740 = vadd.xlane.f32.xlu1 %v739_v37 }
 0x534   : > { %978 = vrot.lane.b32.xlu1 %v543_v11, %s2101_s22 }
 0x569   : > { %v825_v38 = vpop.permute.xlu0 %824  ;;  %v748_v39 = vpop.permute.xlu1 %747 }
 0x56a   : > { %1837 = vmatpush3.msra.mxu1 %v748_v39 }
 0x56b   : > { %1841 = vmatprep.subr.mxu1 %v2097_v0 }
 0x56d   : > { %v903_v40 = vpop.permute.xlu0 %902  ;;  %v981_v42 = vpop.permute.xlu1 %980 }
 0x56e   : > { %1847 = vmatpush3.xpose.msk.msra.mxu0 %vm567_vm3, %v903_v40 }
 0x56f   : > { %1856 = vmatprep.subr.mxu0 %v2097_v0 }
 0x571   : > { %v901_v41 = vpop.permute.xlu0 %900 }
 0x572   : > { %1849 = vmatmul.mubr.msk.f32.vlgmr.msra.gmra.mrb[0].mxu0 %vm567_vm3, %v901_v41 }
 0x573   : > { %1858 = vmatprep.mubr.msk.f32.mxu0 %vm2098_vm2, %v2097_v0 }
 0x5ac   : > { %v738_v43 = vpop.xlane.xlu1 %737 }
 0x5ad   : > { %2037 = vrcp.f32 %v738_v43 }
 0x5b0   : > { %v741_v44 = vpop.xlane.xlu1 %740 }
 0x5b1   : > { %2039 = vrcp.f32 %v741_v44 }
 0x5b4   : > { %v979_v49 = vpop.permute.xlu1 %978 }
 0x5b7   : > { %v2038_v45 = vpop.eup %2037 }
 0x5b8   : > { %v744_v46 = vmul.f32 %v2038_v45, %v2034_v34 }
 0x5ba   : > { %1839 = vmatmul.mubr.msk.f32.vlgmr.msra.gmra.mrb[8].mxu1 %vm723_vm4, %v744_v46 }
 0x5bb   : > { %v2040_v47 = vpop.eup %2039  ;;  %1842 = vmatpush3.msra.mxu1 %v825_v38  ;;  %1843 = vmatprep.mubr.msk.f32.mxu1 %vm2098_vm2, %v2097_v0 }
 0x5bc   : > { %v745_v48 = vmul.f32 %v2040_v47, %v2036_v36  ;;  %1851 = vmatprep.subr.mxu1 %v2097_v0 }
 0x5be   : > { %1844 = vmatmul.mubr.msk.f32.vlgmr.msra.gmra.mrb[10].mxu1 %vm723_vm4, %v745_v48 }
 0x5bf   : > { %1853 = vmatprep.mubr.msk.f32.mxu1 %vm2098_vm2, %v2097_v0 }
 0x5c2   : > { %1852 = vmatpush3.xpose.msk.msra.mxu1 %vm567_vm3, %v981_v42 }
 0x5c3   : > { %1861 = vmatprep.subr.mxu1 %v2097_v0 }
 0x5c5   : > { %1854 = vmatmul.mubr.msk.f32.vlgmr.msra.gmra.mrb[12].mxu1 %vm567_vm3, %v979_v49 }
 0x5c6   : > { %1863 = vmatprep.mubr.msk.f32.mxu1 %vm2098_vm2, %v2097_v0 }
 0x645   : > { %v974_v50 = vpop.f32.mrb[0].mxu0 }
 0x646   : > { %v1056_v51 = vmul.f32 0.25, %v974_v50  ;;  %v1850_v53 = vpop.f32.mrb[1].mxu0  ;;  %v293_v50 = vld [vmem:[%s2161_s8] sm:$0xff] }
 0x648   : > { %v1058_v54 = vsel %vm723_vm4, %v1056_v51, -inf }
 0x649   : > { %1059 = vmax.xlane.f32.xlu0 %v1058_v54  ;;  %v295_v54 = vld [vmem:[%s2161_s8 + $0x10] sm:$0xff] }
 0x68d   : > { %v819_v55 = vpop.f32.mrb[8].mxu1 }
 0x68e   : > { %v1840_v56 = vpop.f32.mrb[9].mxu1 }
 0x691   : > { %v896_v57 = vpop.f32.mrb[10].mxu1 }
 0x692   : > { %v1845_v58 = vpop.f32.mrb[11].mxu1 }
 0x693   : > { %v299_v58 = vld [vmem:[%s2166_s11 + $0x8] sm:$0xff] }
 0x698   : > { %v1052_v59 = vpop.f32.mrb[12].mxu1 }
 0x699   : > { %v1057_v60 = vmul.f32 0.25, %v1052_v59  ;;  %v1855_v61 = vpop.f32.mrb[13].mxu1  ;;  %v300_v59 = vld [vmem:[%s2166_s11 + $0x10] sm:$0xff] }
 0x69a   : > { %v301_v61 = vld [vmem:[%s2166_s11 + $0x18] sm:$0xff] }
 0x69b   : > { %v1061_v1 = vsel %vm723_vm4, %v1057_v60, -inf }
 0x69c   : > { %1062 = vmax.xlane.f32.xlu1 %v1061_v1  ;;  %v1962_v1 = vpack.c.bf16 %v301_v61, %v300_v59 }
 0x6ad   : > { %1156 = vrot.lane.b32.xlu1 %v2239_v28, %s2102_s23 }
 0x6d6   : > { %v1060_v0 = vpop.xlane.xlu0 %1059 }
 0x6d7   : > { %v1064_v2 = vsub.f32 %v1056_v51, %v1060_v0  ;;  %v294_v51 = vld [vmem:[%s2161_s8 + $0x8] sm:$0xff]  ;;  %v302_v0 = vld [vmem:[%s2166_s11 + $0x20] sm:$0xff] }
 0x6d8   : > { %v1950_v53 = vpack.c.bf16 %v294_v51, %v293_v50 }
 0x6d9   : > { %v1066_v3 = vmul.f32 1.442695, %v1064_v2  ;;  %v303_v2 = vld [vmem:[%s2166_s11 + $0x28] sm:$0xff] }
 0x6db   : > { %2041 = vpow2.f32 %v1066_v3  ;;  %v1966_v3 = vpack.c.bf16 %v303_v2, %v302_v0 }
 0x6e5   : > { %v2042_v4 = vpop.eup %2041 }
 0x6e6   : > { %v1070_v5 = vsel %vm723_vm4, %v2042_v4, 0.0 }
 0x6e7   : > { %1071 = vadd.xlane.f32.xlu0 %v1070_v5 }
 0x729   : > { %v1063_v6 = vpop.xlane.xlu1 %1062 }
 0x72a   : > { %v1065_v7 = vsub.f32 %v1057_v60, %v1063_v6 }
 0x72c   : > { %v1068_v8 = vmul.f32 1.442695, %v1065_v7 }
 0x72d   : > { %v1157_v9 = vpop.permute.xlu1 %1156 }
 0x72e   : > { %2043 = vpow2.f32 %v1068_v8  ;;  %1862 = vmatpush3.msra.mxu1 %v1157_v9 }
 0x72f   : > { %1951 = vmatprep.subr.bf16.mxu1 %v1950_v53 }
 0x738   : > { %v2044_v10 = vpop.eup %2043 }
 0x739   : > { %v1073_v11 = vsel %vm723_vm4, %v2044_v10, 0.0 }
 0x73a   : > { %1074 = vadd.xlane.f32.xlu0 %v1073_v11  ;;  %v284_v11 = vld [vmem:[%s2156_s29 + $0x10] sm:$0x3] }
 0x73b   : > { %v1538_v51 = vrot.slane %v284_v11, %v431_v52 }
 0x750   : > { %1080 = vrot.lane.b32.xlu0 %v2237_v27, %s2102_s23  ;;  %v1946_v27 = vpack.c.bf16 %v288_v26, %v286_v25  ;;  %v305_v25 = vld [vmem:[%s2166_s11 + $0x38] sm:$0xff] }
 0x774   : > { %v1072_v15 = vpop.xlane.xlu0 %1071 }
 0x775   : > { %2045 = vrcp.f32 %v1072_v15 }
 0x77f   : > { %v2046_v17 = vpop.eup %2045 }
 0x780   : > { %v1078_v18 = vmul.f32 %v2046_v17, %v2042_v4 }
 0x7c7   : > { %v1075_v16 = vpop.xlane.xlu0 %1074 }
 0x7c8   : > { %2047 = vrcp.f32 %v1075_v16 }
 0x7cb   : > { %v1081_v19 = vpop.permute.xlu0 %1080 }
 0x7cc   : > { %1857 = vmatpush3.msra.mxu0 %v1081_v19  ;;  %v1437_v19 = vrot.slane %v284_v11, %v316_v13  ;;  %v306_v13 = vld [vmem:[%s2166_s11 + $0x40] sm:$0xff] }
 0x7cd   : > { %1859 = vmatmul.mubr.msk.f32.vlgmr.msra.gmra.mrb[2].mxu0 %vm723_vm4, %v1078_v18  ;;  %1943 = vmatprep.subr.bf16.mxu0 %v1942_v24 }
 0x7ce   : > { %1945 = vmatpush3.bf16.msra.mxu0 %v1942_v24 }
 0x7cf   : > { %1947 = vmatprep.subr.bf16.mxu0 %v1946_v27 }
 0x7d2   : > { %v2048_v20 = vpop.eup %2047 }
 0x7d3   : > { %v1079_v21 = vmul.f32 %v2048_v20, %v2044_v10  ;;  %v1430_v10 = vsub.s32 7, %v2181_v12 }
 0x7d5   : > { %1864 = vmatmul.mubr.msk.f32.vlgmr.msra.gmra.mrb[14].mxu1 %vm723_vm4, %v1079_v21  ;;  %v1431_v15 = vrot.slane %v2185_v14, %v1430_v10  ;;  %v304_v14 = vld [vmem:[%s2166_s11 + $0x30] sm:$0xff] }
 0x7d6   : > { %1953 = vmatpush3.bf16.msra.mxu1 %v1950_v53  ;;  %v1970_v26 = vpack.c.bf16 %v305_v25, %v304_v14 }
 0x8a0   : > { %v1152_v28 = vpop.f32.mrb[2].mxu0 }
 0x8a1   : > { %v1860_v29 = vpop.f32.mrb[3].mxu0  ;;  %1870 = vmatprep.mubr.msk.f32.mxu0 %vm567_vm3, %v1152_v28 }
 0x8a2   : > { %v308_v29 = vld [vmem:[%s2166_s11 + $0x50] sm:$0xff] }
 0x8a8   : > { %v1228_v30 = vpop.f32.mrb[14].mxu1 }
 0x8a9   : > { %v1865_v31 = vpop.f32.mrb[15].mxu1  ;;  %1871 = vmatmul.mubr.msk.f32.vlgmr.msra.gmra.mrb[4].mxu0 %vm567_vm3, %v1228_v30  ;;  %v309_v30 = vld [vmem:[%s2166_s11 + $0x58] sm:$0xff] }
 0x8aa   : > { %1949 = vmatpush3.bf16.msra.mxu0 %v1946_v27  ;;  %1877 = vmatprep.mubr.msk.f32.mxu0 %vm567_vm3, %v819_v55  ;;  %v296_v55 = vld [vmem:[%s2161_s8 + $0x18] sm:$0xff]  ;;  %v307_v27 = vld [vmem:[%s2166_s11 + $0x48] sm:$0xff]  ;;  %v1978_v31 = vpack.c.bf16 %v309_v30, %v308_v29 }
 0x8ab   : > { %v1954_v56 = vpack.c.bf16 %v296_v55, %v295_v54  ;;  %v1974_v28 = vpack.c.bf16 %v307_v27, %v306_v13 }
 0x8ad   : > { %1955 = vmatprep.subr.bf16.mxu1 %v1954_v56 }
 0x8ae   : > { %1957 = vmatpush3.bf16.msra.mxu1 %v1954_v56 }
 0x8b1   : > { %1878 = vmatmul.mubr.msk.f32.vlgmr.msra.gmra.mrb[4].mxu0 %vm567_vm3, %v896_v57  ;;  %v298_v57 = vld [vmem:[%s2166_s11] sm:$0xff] }
 0x8b2   : > { %v1958_v60 = vpack.c.bf16 %v299_v58, %v298_v57 }
 0x8b4   : > { %1959 = vmatprep.subr.bf16.mxu0 %v1958_v60 }
 0x8b5   : > { %1961 = vmatpush3.bf16.msra.mxu0 %v1958_v60 }
 0x8b6   : > { %1963 = vmatprep.subr.bf16.mxu0 %v1962_v1 }
 0x8b9   : > { %1965 = vmatpush3.bf16.msra.mxu0 %v1962_v1 }
 0x8ba   : > { %1967 = vmatprep.subr.bf16.mxu0 %v1966_v3 }
 0x8bd   : > { %1969 = vmatpush3.bf16.msra.mxu0 %v1966_v3 }
 0x8be   : > { %1971 = vmatprep.subr.bf16.mxu0 %v1970_v26 }
 0x8c1   : > { %1973 = vmatpush3.bf16.msra.mxu0 %v1970_v26 }
 0x8c2   : > { %1975 = vmatprep.subr.bf16.mxu0 %v1974_v28 }
 0x8c5   : > { %1977 = vmatpush3.bf16.msra.mxu0 %v1974_v28 }
 0x8c6   : > { %1979 = vmatprep.subr.bf16.mxu0 %v1978_v31 }
 0x8c9   : > { %1981 = vmatpush3.bf16.msra.mxu0 %v1978_v31 }
 0x984   : > { %v1879_v34 = vpop.f32.mrb[4].mxu0 }
 0x985   : > { %v1395_v35 = vadd.f32 %v1879_v34, %v2207_v63  ;;  %v1385_v36 = vpop.f32.mrb[5].mxu0 }
 0x986   : > { %v1394_v37 = vadd.f32 %v1385_v36, %v2205_v62  ;;  %v313_v36 = vld [vmem:[%s2166_s11 + $0x78] sm:$0xff] }
 0x987   : > { %v1401_v38 = vadd.f32 %v1399_v33, %v1395_v35  ;;  %v312_v35 = vld [vmem:[%s2166_s11 + $0x70] sm:$0xff] }
 0x988   : > { %v1400_v39 = vadd.f32 %v1399_v33, %v1394_v37  ;;  %v311_v33 = vld [vmem:[%s2166_s11 + $0x68] sm:$0xff]  ;;  %v1986_v37 = vpack.c.bf16 %v313_v36, %v312_v35 }
 0x989   : > { %v1405_v40 = vsel %vm318_vm1, %v1401_v38, 0.0  ;;  %v1982_v34 = vpack.c.bf16 %v311_v33, %v310_v32 }
 0x98a   : > { %1406 = vadd.xlane.f32.xlu0 %v1405_v40  ;;  %v1402_v41 = vsel %vm318_vm1, %v1400_v39, 0.0 }
 0x98b   : > { %1403 = vadd.xlane.f32.xlu1 %v1402_v41  ;;  %1983 = vmatprep.subr.bf16.mxu0 %v1982_v34 }
 0x98c   : > { %1985 = vmatpush3.bf16.msra.mxu0 %v1982_v34 }
 0x98d   : > { %1987 = vmatprep.subr.bf16.mxu0 %v1986_v37 }
 0x990   : > { %1989 = vmatpush3.bf16.msra.mxu0 %v1986_v37 }
 0xa17   : > { %v1407_v42 = vpop.xlane.xlu0 %1406 }
 0xa18   : > { %v1409_v43 = vmul.f32 0.03125, %v1407_v42  ;;  %v1404_v44 = vpop.xlane.xlu1 %1403 }
 0xa19   : > { %v1408_v45 = vmul.f32 0.03125, %v1404_v44 }
 0xa1a   : > { %v1411_v63 = vsub.f32 %v1401_v38, %v1409_v43  ;;  %v1735_v38 = vld [vmem:[%s2161_s8 + $0x20] ss:$0 sm:$0xff] }
 0xa1b   : > { %v1410_v46 = vsub.f32 %v1400_v39, %v1408_v45 }
 0xa1c   : > { %v1413_v47 = vmul.f32 %v1411_v63, %v1411_v63 }
 0xa1d   : > { %v1412_v62 = vmul.f32 %v1410_v46, %v1410_v46 }
 0xa1e   : > { %v1417_v48 = vsel %vm318_vm1, %v1413_v47, 0.0 }
 0xa1f   : > { %1418 = vadd.xlane.f32.xlu1 %v1417_v48  ;;  %v1414_v49 = vsel %vm318_vm1, %v1412_v62, 0.0 }
 0xa20   : > { %1415 = vadd.xlane.f32.xlu0 %v1414_v49 }
 0xaac   : > { %v1419_v4 = vpop.xlane.xlu1 %1418 }
 0xaad   : > { %v1421_v5 = vmul.f32 0.03125, %v1419_v4  ;;  %v1416_v6 = vpop.xlane.xlu0 %1415 }
 0xaae   : > { %v1420_v7 = vmul.f32 0.03125, %v1416_v6 }
 0xaaf   : > { %v1423_v8 = vadd.f32 1e-05, %v1421_v5 }
 0xab0   : > { %v1422_v9 = vadd.f32 1e-05, %v1420_v7 }
 0xab1   : > { %2049 = vrsqrt.f32 %v1423_v8 }
 0xab2   : > { %2051 = vrsqrt.f32 %v1422_v9 }
 0xabb   : > { %v2050_v16 = vpop.eup %2049 }
 0xabc   : > { %v2052_v17 = vpop.eup %2051  ;;  %v1427_v18 = vmul.f32 %v2050_v16, %v1411_v63 }
 0xabd   : > { %v1426_v20 = vmul.f32 %v2052_v17, %v1410_v46 }
 0xabe   : > { %v1433_v21 = vmul.f32 %v1431_v15, %v1427_v18 }
 0xabf   : > { %v1432_v22 = vmul.f32 %v1431_v15, %v1426_v20 }
 0xac0   : > { %v1439_v24 = vadd.f32 %v1437_v19, %v1433_v21 }
 0xac1   : > { %v1438_v23 = vadd.f32 %v1437_v19, %v1432_v22 }
 0xac3   : > { %1888 = vmatprep.mubr.msk.f32.mxu1 %vm318_vm1, %v1438_v23 }
 0xac4   : > { %1889 = vmatmul.mubr.msk.f32.vlgmr.msra.gmra.mrb[16].mxu1 %vm318_vm1, %v1439_v24 }
 0xb97   : > { %v1890_v39 = vpop.f32.mrb[16].mxu1 }
 0xb98   : > { %v1522_v40 = vadd.f32 %v1890_v39, %v1735_v38  ;;  %v1516_v41 = vpop.f32.mrb[17].mxu1 }
 0xb99   : > { %v1517_v42 = vadd.f32 %v1735_v38, %v1516_v41 }
 0xb9a   : > { %v1528_v43 = vmul.f32 0.70710677, %v1522_v40  ;;  %v1526_v48 = vmul.f32 0.5, %v1522_v40 }
 0xb9b   : > { %v1527_v44 = vmul.f32 0.70710677, %v1517_v42  ;;  %v1525_v47 = vmul.f32 0.5, %v1517_v42 }
 0xb9c   : > { %2053 = verf.f32 %v1528_v43 }
 0xb9d   : > { %2055 = verf.f32 %v1527_v44 }
 0xba6   : > { %v2054_v45 = vpop.eup %2053 }
 0xba7   : > { %v2056_v63 = vpop.eup %2055  ;;  %v1532_v46 = vadd.f32 1.0, %v2054_v45 }
 0xba8   : > { %v1531_v62 = vadd.f32 1.0, %v2056_v63 }
 0xba9   : > { %v1534_v50 = vmul.f32 %v1532_v46, %v1526_v48 }
 0xbaa   : > { %v1533_v49 = vmul.f32 %v1531_v62, %v1525_v47 }
 0xbac   : > { %1923 = vmatprep.mubr.f32.mxu0 %v1533_v49 }
 0xbad   : > { %1924 = vmatmul.mubr.f32.vlgmr.msra.gmra.mrb[6].mxu0 %v1534_v50 }
 0xc80   : > { %v1925_v53 = vpop.f32.mrb[6].mxu0 }
 0xc81   : > { %v1611_v54 = vadd.f32 %v1925_v53, %v1538_v51  ;;  %v1605_v55 = vpop.f32.mrb[7].mxu0 }
 0xc82   : > { %v1606_v56 = vadd.f32 %v1605_v55, %v1538_v51 }
 0xc83   : > { %v1615_v57 = vadd.f32 %v1611_v54, %v1439_v24 }
 0xc84   : > { %v1614_v58 = vadd.f32 %v1606_v56, %v1438_v23 }
 0xc85   : > { %1617 = vst.msk [vmem:[#allocation2 + $0x8] sm:$0xff] %vm318_vm1, %v1615_v57  ;;  %1619 = vst.msk [vmem:[#allocation3 + $0x8] sm:$0xff] %vm318_vm1, %v1615_v57 }
 0xc86   : > { %1616 = vst.msk [vmem:[#allocation2] sm:$0xff] %vm318_vm1, %v1614_v58  ;;  %1618 = vst.msk [vmem:[#allocation3] sm:$0xff] %vm318_vm1, %v1614_v58 }
 0xc87   : > { %2070 = shalt.err (!%p2067_p12)
}
 0xc88   : > { %s2071_s29 = scalar_lea.hbm %s2352_s5, 256 }
 0xc89   : > { %p2072_p13 = scmp.ne.s32.totalorder %s2352_s5, %s2071_s29  ;;  %p2077_p2 = scmp.lt.u32.totalorder %s2071_s29, %s2352_s5 }
 0xc8b   : > { %p2073_p0 = pnand %p2072_p13, %p1998_p5 }
 0xc8d   : > { %p2074_p1 = pneg %p2073_p0 }
 0xc8f   : > { %p2079_p3 = pnand %p2077_p2, %p2074_p1 }
 0xc91   : > { %2082 = shalt.err (!%p2079_p3)
}
 0xc92   : > { %s2104_s9 = smov 128   ;;  %s2105_s10 = smov 8  }
 0xc93   : > { %1995 = dma.vmem_to_hbm [thread:$0]  (%p1998_p5), %s1627_s25, 256, %s2352_s5, [#allocation4], %s2104_s9, %s2104_s9, %s2105_s10  }
 0xc94   : > { %2088 = dma.done.wait (%p1998_p5), [#allocation4], 256  }
 0xc95   : > { %2090 = vsyncadd (%p1998_p5), [#allocation4], 4294967040 }
 0xc96 PF: > { %s16_s18 = sadd.s32 1, %s2093_s18  }
 0xc97   : > { %p13_p4 = scmp.ge.s32.totalorder %s16_s18, 4  }
 0xc99   :  { %15 = sbr.rel (!%p13_p4) target bundleno = 1 (0x1), region = 80 }
 0xca0   :  { %1642 = vsyncpa [#allocation4], 1 }
 0xca1   :  { %1644 = vsyncpa [#allocation4 + $0x1], 1 }

</bundles_post_ra>
